<compile_context>
chip_gen: v7x
topology: tpu7x:2x2x1
jax: 0.10.0
libtpu: 0.0.40
codegen_flags: <defaults>
</compile_context>

<pallas_src>
import functools
import numpy as np
import jax
import jax.numpy as jnp
from jax.experimental import pallas as pl
from jax.experimental.pallas import tpu as pltpu


def _round_up(x, m):
    return ((x + m - 1) // m) * m


def _tpu_generation():
    """Best-effort TPU generation detection (None => unknown backend)."""
    try:
        dev = jax.devices()[0]
        if dev.platform != "tpu":
            return None
        kind = dev.device_kind.lower()
    except Exception:
        return None
    if "v6" in kind:
        return 6
    if "v5" in kind:
        return 5
    if "7" in kind:          # 'tpu7x' style names
        return 7
    return None


# ----------------------------------------------------------------------------
# Kernel 1: GCN (linear -> adjacency aggregation -> bias -> PReLU) + readout.
# ----------------------------------------------------------------------------
def _gcn_readout_kernel(feat_ref, adj_ref, w_ref, b_ref, alpha_ref, out_ref, *,
                        n_h, out_w, readout):
    S1, TB, n_in = feat_ref.shape

    # GCN Linear(n_in, n_h, bias=False): one MXU matmul over all S1*TB node rows.
    # (S1, TB, n_in) -> (S1*TB, n_in) only merges *leading* dims with TB a
    # multiple of the sublane tile, so it is layout-preserving (no relayout).
    feat2 = feat_ref[...].reshape(S1 * TB, n_in)
    seq = jnp.dot(feat2, w_ref[...], preferred_element_type=jnp.float32)
    # Per-node-index (TB, n_h) slabs; slices are sublane-tile aligned.
    seq_k = [seq[k * TB:(k + 1) * TB, :] for k in range(S1)]

    # Adjacency columns are reused S1 times each -> upcast to f32 once
    # (v5e has no bf16 VALU; tiny tile, negligible cost elsewhere).
    adj = adj_ref[...].astype(jnp.float32)                     # (TB, S1*S1)
    bias = jnp.broadcast_to(b_ref[...], (TB, n_h)).astype(jnp.float32)  # hoisted
    alpha = alpha_ref[0]                                       # SMEM scalar

    h_mv = None
    c = None
    # out[b, i, :] = bias + sum_k adj[b, i, k] * seq[b, k, :]   (bias folded into init)
    # h_i = PReLU(out_i); row S1-1 is the target embedding, rows 0..S1-2 feed the readout.
    for i in range(S1):
        acc = bias
        for k in range(S1):
            acc = acc + adj[:, i * S1 + k:i * S1 + k + 1] * seq_k[k]
        h_i = jnp.where(acc > 0, acc, alpha * acc)             # PReLU (shared alpha)
        if i == S1 - 1:
            h_mv = h_i
        elif c is None:
            c = h_i
        elif readout == "avg":
            c = c + h_i
        elif readout == "max":
            c = jnp.maximum(c, h_i)
        else:  # "min"  (validated in the wrapper)
            c = jnp.minimum(c, h_i)
    if readout == "avg":
        c = c * (1.0 / float(S1 - 1))                          # constant scale, no divide

    # Single lane-dense, unmasked full-tile store of the packed [h_mv | c | pad] slab.
    packed = jnp.concatenate([h_mv, c], axis=-1)
    if out_w > 2 * n_h:
        packed = jnp.concatenate(
            [packed, jnp.zeros((TB, out_w - 2 * n_h), jnp.float32)], axis=-1)
    out_ref[...] = packed


def _choose_tile(B, S1, n_in, n_h, out_w, in_itemsize):
    """Pick TB (subgraphs per grid step) from padded-tile VMEM accounting."""
    gen = _tpu_generation()
    lane_in = _round_up(n_in, 128)
    lane_adj = _round_up(S1 * S1, 128)
    lane_h = _round_up(n_h, 128)
    # Bytes per subgraph per grid step, including (sublane, lane) tile padding.
    per_sub = 2 * S1 * lane_in * in_itemsize          # feature block, double-buffered
    per_sub += 2 * lane_adj * in_itemsize             # adjacency block, double-buffered
    per_sub += 2 * out_w * 4                          # packed output block, double-buffered
    per_sub += 2 * S1 * lane_h * 4                    # seq + per-k slices (f32 temps)
    per_sub += 6 * lane_h * 4                         # accumulators / misc f32 temps
    fixed = 2 * _round_up(n_in, 16) * lane_h * in_itemsize   # weight block (dbl-buffered)
    fixed += 2 * 8 * lane_h * 4                               # bias block

    if gen in (5, 6):        # 128 MiB physical VMEM: go wide, raise scoped limit.
        budget, tb_hi, vmem_limit = 40 << 20, 512, 64 << 20
    elif gen == 7:           # 64 MiB physical VMEM, 2 TensorCores: stay modest.
        budget, tb_hi, vmem_limit = 16 << 20, 256, 32 << 20
    else:                    # unknown backend: conservative, leave scoped limit alone.
        budget, tb_hi, vmem_limit = 8 << 20, 256, None

    tb = max(16, (budget - fixed) // max(per_sub, 1))
    tb = max(16, min(tb_hi, (tb // 16) * 16))         # multiple of 16 (bf16 sublane tile)
    b16 = _round_up(B, 16)
    if gen == 7 and b16 >= 32:
        # Keep >= 2 grid steps so both v7x TensorCores get work.
        tb = min(tb, max(16, (b16 // 2 // 16) * 16))
    tb = min(tb, b16)
    return tb, vmem_limit


def gcn_readout(feat_t, adj_flat, w_gcn, b_gcn, prelu_alpha, *, n_h, readout,
                compute_dtype=jnp.bfloat16):
    """feat_t: (S1, B, n_in) node-index-major, adj_flat: (B, S1*S1).
    Returns the packed (B_pad, round_up(2*n_h,128)) [h_mv | c] slab (float32)."""
    S1, B, n_in = feat_t.shape
    out_w = _round_up(2 * n_h, 128)
    in_itemsize = jnp.dtype(compute_dtype).itemsize
    TB, vmem_limit = _choose_tile(B, S1, n_in, n_h, out_w, in_itemsize)
    B_pad = _round_up(B, TB)

    if B_pad != B:
        feat_t = jnp.pad(feat_t, ((0, 0), (0, B_pad - B), (0, 0)))
        adj_flat = jnp.pad(adj_flat, ((0, B_pad - B), (0, 0)))
    feat_t = feat_t.astype(compute_dtype)       # features / adjacency / weight in bf16:
    adj_flat = adj_flat.astype(compute_dtype)   # exact for 0/1 adjacency & BOW features,
    w = w_gcn.astype(compute_dtype)             # halves HBM bytes, 2x MXU rate.

    extra = {"vmem_limit_bytes": vmem_limit} if vmem_limit else {}
    kernel = functools.partial(_gcn_readout_kernel, n_h=n_h, out_w=out_w,
                               readout=readout)
    packed = pl.pallas_call(
        kernel,
        out_shape=jax.ShapeDtypeStruct((B_pad, out_w), jnp.float32),
        grid_spec=pltpu.PrefetchScalarGridSpec(
            num_scalar_prefetch=0,
            grid=(B_pad // TB,),
            in_specs=[
                pl.BlockSpec((S1, TB, n_in), lambda b: (0, b, 0)),
                pl.BlockSpec((TB, S1 * S1), lambda b: (b, 0)),
                pl.BlockSpec((n_in, n_h), lambda b: (0, 0)),
                pl.BlockSpec((1, n_h), lambda b: (0, 0)),
                pl.BlockSpec(memory_space=pltpu.MemorySpace.SMEM),
            ],
            out_specs=pl.BlockSpec((TB, out_w), lambda b: (b, 0)),
        ),
        compiler_params=pltpu.CompilerParams(
            dimension_semantics=("parallel",), **extra),
    )(feat_t, adj_flat, w, b_gcn.astype(jnp.float32), prelu_alpha)
    return packed


# ----------------------------------------------------------------------------
# Kernel 2: Bilinear discriminator; negative-sample rotations built in-kernel.
#   logits[r, b] = h_mv[b] @ W_bil @ c_r[b] + bias
# ----------------------------------------------------------------------------
def _bilinear_disc_kernel(packed_ref, w_ref, b_ref, out_ref, *, n_h, B, R):
    B_pad = packed_ref.shape[0]
    h_mv = packed_ref[:, :n_h]                       # (B_pad, n_h)
    c = packed_ref[:, n_h:2 * n_h]                   # (B_pad, n_h)
    t = jnp.dot(h_mv, w_ref[...], preferred_element_type=jnp.float32)

    c_list = [c]
    for _ in range(R - 1):
        prev = c_list[-1]
        # torch: c_mi = cat((c_mi[-2:-1, :], c_mi[:-1, :]), 0)  on the first B rows;
        # rows >= B are padding and never feed back into rows < B.
        pieces = [prev[B - 2:B - 1, :], prev[:B - 1, :]]
        if B_pad > B:
            pieces.append(prev[B:, :])
        c_list.append(jnp.concatenate(pieces, axis=0))
    c_all = jnp.stack(c_list, axis=0)                # (R, B_pad, n_h)
    out_ref[...] = jnp.sum(t[None, :, :] * c_all, axis=-1) + b_ref[0]


def bilinear_disc(packed, w_bil, b_bil, *, n_h, batch_size, negsamp_round):
    B_pad = packed.shape[0]
    R = negsamp_round + 1
    kernel = functools.partial(_bilinear_disc_kernel, n_h=n_h, B=batch_size, R=R)
    logits = pl.pallas_call(
        kernel,
        out_shape=jax.ShapeDtypeStruct((R, B_pad), jnp.float32),
        in_specs=[
            pl.BlockSpec(memory_space=pltpu.MemorySpace.VMEM),
            pl.BlockSpec(memory_space=pltpu.MemorySpace.VMEM),
            pl.BlockSpec(memory_space=pltpu.MemorySpace.SMEM),
        ],
        out_specs=pl.BlockSpec(memory_space=pltpu.MemorySpace.VMEM),
    )(packed, w_bil, b_bil)
    # TODO(synk): add a B-tiled grid here if batch_size grows to many thousands.
    # torch.cat(tuple(scs)): positive scores first, then each negative round.
    return logits[:, :batch_size].reshape(R * batch_size, 1)


# ----------------------------------------------------------------------------
# CoLA_Base forward (glue in plain JAX, hot path in Pallas).
# ----------------------------------------------------------------------------
class CoLABase:
    def __init__(self, n_in, n_h, negsamp_round, readout, subgraph_size, key,
                 compute_dtype=jnp.bfloat16):
        if readout not in ("avg", "max", "min"):
            # TODO(synk): 'weighted_sum' readout (hardcodes repeat(1,1,64)) not implemented.
            raise NotImplementedError(f"readout={readout!r}")
        self.n_in = n_in
        self.n_h = n_h
        self.negsamp_round = negsamp_round
        self.readout = readout
        self.subgraph_size = subgraph_size
        self.compute_dtype = compute_dtype

        k1, k2 = jax.random.split(key)
        # GCN: Linear(n_in, n_h, bias=False) xavier-uniform, extra additive bias=0, PReLU(0.25).
        bound_g = float(np.sqrt(6.0 / (n_in + n_h)))
        self.w_gcn = jax.random.uniform(k1, (n_in, n_h), jnp.float32, -bound_g, bound_g)
        self.b_gcn = jnp.zeros((1, n_h), jnp.float32)
        self.prelu_alpha = jnp.full((1,), 0.25, jnp.float32)
        # Discriminator: nn.Bilinear(n_h, n_h, 1), xavier-uniform weight, bias=0.
        # score(h, c) = h @ W @ c + b  (W = torch weight[0], used untransposed).
        bound_b = float(np.sqrt(6.0 / (n_h * n_h + n_h)))
        self.w_bil = jax.random.uniform(k2, (n_h, n_h), jnp.float32, -bound_b, bound_b)
        self.b_bil = jnp.zeros((1,), jnp.float32)

    def __call__(self, x, adj, idx, subgraphs, batch_size):
        # TODO(synk): sparse=True path (torch.sparse mm) not implemented; dense adj only.
        S, n_in = self.subgraph_size, self.n_in
        B = batch_size

        # --- batch construction: one vectorized gather (host-side glue) ---
        sub_idx = jnp.asarray(np.asarray(subgraphs)[np.asarray(idx)], jnp.int32)  # (B, S)
        feat = x[0][sub_idx]                                                      # (B, S, n_in)
        adj_b = adj[0][sub_idx[:, :, None], sub_idx[:, None, :]]                  # (B, S, S)

        # adjacency: append zero row, then a column that is 1 at the target slot.
        batch_adj = jnp.pad(adj_b, ((0, 0), (0, 1), (0, 1)))
        batch_adj = batch_adj.at[:, -1, -1].set(1.0)                              # (B, S+1, S+1)
        adj_flat = batch_adj.reshape(B, (S + 1) * (S + 1))                        # lane-dense 2-D

        # features, node-index-major (S+1, B, n_in): rows 0..S-2 context, row S-1
        # zeros (anonymized target slot), row S the target node's own features.
        feat_bs = jnp.transpose(feat, (1, 0, 2))                                  # (S, B, n_in)
        feat_t = jnp.concatenate(
            [feat_bs[:S - 1], jnp.zeros((1, B, n_in), feat.dtype), feat_bs[S - 1:]],
            axis=0)                                                               # (S+1, B, n_in)

        # --- GCN + PReLU + readout -> packed [h_mv | c] slab (Pallas kernel 1) ---
        packed = gcn_readout(feat_t, adj_flat, self.w_gcn, self.b_gcn,
                             self.prelu_alpha, n_h=self.n_h, readout=self.readout,
                             compute_dtype=self.compute_dtype)

        # --- bilinear discriminator, rotations generated in-kernel (kernel 2) ---
        return bilinear_disc(packed, self.w_bil, self.b_bil, n_h=self.n_h,
                             batch_size=B, negsamp_round=self.negsamp_round)


# ----------------------------------------------------------------------------
# Pure-jnp reference (mirrors the torch module; uses the same bf16 input cast
# so it differs from the kernels only by summation order).
# ----------------------------------------------------------------------------
def _reference_forward(model, x, adj, idx, subgraphs, batch_size):
    S, n_in = model.subgraph_size, model.n_in
    B = batch_size
    sub_idx = np.asarray(subgraphs)[np.asarray(idx)]
    feat = np.asarray(x[0])[sub_idx]
    a = np.asarray(adj[0])[sub_idx[:, :, None], sub_idx[:, None, :]]
    batch_adj = np.zeros((B, S + 1, S + 1), np.float32)
    batch_adj[:, :S, :S] = a
    batch_adj[:, S, S] = 1.0
    bf = np.concatenate([feat[:, :S - 1], np.zeros((B, 1, n_in), np.float32),
                         feat[:, S - 1:]], axis=1)
    cdt = model.compute_dtype
    bfc = jnp.asarray(bf).astype(cdt).astype(jnp.float32)
    adc = jnp.asarray(batch_adj).astype(cdt).astype(jnp.float32)
    W = model.w_gcn.astype(cdt).astype(jnp.float32)
    seq = jnp.einsum("bsi,ih->bsh", bfc, W)
    out = jnp.einsum("bij,bjh->bih", adc, seq) + model.b_gcn
    alpha = model.prelu_alpha[0]
    h1 = jnp.where(out > 0, out, alpha * out)
    h_mv = h1[:, -1, :]
    if model.readout == "avg":
        c = jnp.mean(h1[:, :-1, :], axis=1)
    elif model.readout == "max":
        c = jnp.max(h1[:, :-1, :], axis=1)
    else:
        c = jnp.min(h1[:, :-1, :], axis=1)
    t = h_mv @ model.w_bil
    scs = [jnp.sum(t * c, axis=-1, keepdims=True) + model.b_bil[0]]
    c_mi = c
    for _ in range(model.negsamp_round):
        c_mi = jnp.concatenate([c_mi[-2:-1, :], c_mi[:-1, :]], axis=0)
        scs.append(jnp.sum(t * c_mi, axis=-1, keepdims=True) + model.b_bil[0])
    return jnp.concatenate(scs, axis=0)


if __name__ == "__main__":
    key = jax.random.PRNGKey(0)
    kx, ka, ks, kp = jax.random.split(key, 4)

    # Small, module-consistent shapes.
    N, n_in, n_h = 16, 8, 32
    subgraph_size = 4
    batch_size = 4
    negsamp_round = 2
    readout = "avg"

    x = jax.random.normal(kx, (1, N, n_in), jnp.float32)
    adj_up = jax.random.uniform(ka, (1, N, N), jnp.float32)
    adj = ((adj_up + jnp.swapaxes(adj_up, 1, 2)) * 0.5 > 0.6).astype(jnp.float32)

    subgraphs = np.array(
        jax.random.randint(ks, (N, subgraph_size), 0, N), dtype=np.int64)
    idx = list(range(batch_size))

    model = CoLABase(n_in, n_h, negsamp_round, readout, subgraph_size, kp)
    logits = jax.block_until_ready(model(x, adj, idx, subgraphs, batch_size))

    assert logits.shape == ((negsamp_round + 1) * batch_size, 1), logits.shape
    assert bool(jnp.all(jnp.isfinite(logits)))

    ref = _reference_forward(model, x, adj, idx, subgraphs, batch_size)
    np.testing.assert_allclose(np.asarray(logits), np.asarray(ref),
                               rtol=2e-2, atol=2e-2)
    print("KERNEL_OK")
</pallas_src>

<mosaic_0001>
module attributes {stable_mosaic.version = 11 : i64} {
  func.func @_gcn_readout_kernel(%arg0: i32, %arg1: memref<5x16x8xbf16, #tpu.memory_space<vmem>>, %arg2: memref<16x25xbf16, #tpu.memory_space<vmem>>, %arg3: memref<8x32xbf16, #tpu.memory_space<vmem>>, %arg4: memref<1x32xf32, #tpu.memory_space<vmem>>, %arg5: memref<1xf32, #tpu.memory_space<smem>>, %arg6: memref<16x128xf32, #tpu.memory_space<vmem>>) attributes {dimension_semantics = [#tpu.dimension_semantics<parallel>], iteration_bounds = array<i64: 1>, scalar_prefetch = 0 : i64, scratch_operands = 0 : i64, tpu.core_type = #tpu.core_type<tc>, window_params = [{transform_indices = @transform_0, window_bounds = array<i64: 5, 16, 8>}, {transform_indices = @transform_1, window_bounds = array<i64: 16, 25>}, {pipeline_mode = #tpu.pipeline_mode<synchronous>, transform_indices = @transform_2, window_bounds = array<i64: 8, 32>}, {pipeline_mode = #tpu.pipeline_mode<synchronous>, transform_indices = @transform_3, window_bounds = array<i64: 1, 32>}, {transform_indices = @transform_4, window_bounds = array<i64: 1>}, {transform_indices = @transform_5, window_bounds = array<i64: 16, 128>}]} {
    %c0 = arith.constant 0 : index
    %c0_0 = arith.constant 0 : index
    %c0_1 = arith.constant 0 : index
    %0 = vector.load %arg1[%c0, %c0_0, %c0_1] : memref<5x16x8xbf16, #tpu.memory_space<vmem>>, vector<5x16x8xbf16>
    %1 = vector.shape_cast %0 : vector<5x16x8xbf16> to vector<80x8xbf16>
    %c0_2 = arith.constant 0 : index
    %c0_3 = arith.constant 0 : index
    %2 = vector.load %arg3[%c0_2, %c0_3] : memref<8x32xbf16, #tpu.memory_space<vmem>>, vector<8x32xbf16>
    %cst = arith.constant dense<0.000000e+00> : vector<80x32xf32>
    %3 = tpu.matmul %1, %2, %cst {dimension_numbers = #tpu.dot_dimension_numbers<[1], [0], [0], [1], [0, 0, 1, 1], [], []>} : vector<80x8xbf16>, vector<8x32xbf16>, vector<80x32xf32> -> vector<80x32xf32>
    %4 = vector.extract_strided_slice %3 {offsets = [0, 0], sizes = [16, 32], strides = [1, 1]} : vector<80x32xf32> to vector<16x32xf32>
    %5 = vector.extract_strided_slice %3 {offsets = [16, 0], sizes = [16, 32], strides = [1, 1]} : vector<80x32xf32> to vector<16x32xf32>
    %6 = vector.extract_strided_slice %3 {offsets = [32, 0], sizes = [16, 32], strides = [1, 1]} : vector<80x32xf32> to vector<16x32xf32>
    %7 = vector.extract_strided_slice %3 {offsets = [48, 0], sizes = [16, 32], strides = [1, 1]} : vector<80x32xf32> to vector<16x32xf32>
    %8 = vector.extract_strided_slice %3 {offsets = [64, 0], sizes = [16, 32], strides = [1, 1]} : vector<80x32xf32> to vector<16x32xf32>
    %c0_4 = arith.constant 0 : index
    %c0_5 = arith.constant 0 : index
    %9 = vector.load %arg2[%c0_4, %c0_5] : memref<16x25xbf16, #tpu.memory_space<vmem>>, vector<16x25xbf16>
    %10 = arith.extf %9 : vector<16x25xbf16> to vector<16x25xf32>
    %c0_6 = arith.constant 0 : index
    %c0_7 = arith.constant 0 : index
    %11 = vector.load %arg4[%c0_6, %c0_7] : memref<1x32xf32, #tpu.memory_space<vmem>>, vector<1x32xf32>
    %12 = vector.shape_cast %11 : vector<1x32xf32> to vector<1x32xf32>
    %13 = vector.broadcast %12 : vector<1x32xf32> to vector<16x32xf32>
    %c0_8 = arith.constant 0 : index
    %14 = memref.load %arg5[%c0_8] : memref<1xf32, #tpu.memory_space<smem>>
    %15 = vector.extract_strided_slice %10 {offsets = [0, 0], sizes = [16, 1], strides = [1, 1]} : vector<16x25xf32> to vector<16x1xf32>
    %16 = vector.broadcast %15 : vector<16x1xf32> to vector<16x32xf32>
    %17 = arith.mulf %16, %4 : vector<16x32xf32>
    %18 = arith.addf %13, %17 : vector<16x32xf32>
    %19 = vector.extract_strided_slice %10 {offsets = [0, 1], sizes = [16, 1], strides = [1, 1]} : vector<16x25xf32> to vector<16x1xf32>
    %20 = vector.broadcast %19 : vector<16x1xf32> to vector<16x32xf32>
    %21 = arith.mulf %20, %5 : vector<16x32xf32>
    %22 = arith.addf %18, %21 : vector<16x32xf32>
    %23 = vector.extract_strided_slice %10 {offsets = [0, 2], sizes = [16, 1], strides = [1, 1]} : vector<16x25xf32> to vector<16x1xf32>
    %24 = vector.broadcast %23 : vector<16x1xf32> to vector<16x32xf32>
    %25 = arith.mulf %24, %6 : vector<16x32xf32>
    %26 = arith.addf %22, %25 : vector<16x32xf32>
    %27 = vector.extract_strided_slice %10 {offsets = [0, 3], sizes = [16, 1], strides = [1, 1]} : vector<16x25xf32> to vector<16x1xf32>
    %28 = vector.broadcast %27 : vector<16x1xf32> to vector<16x32xf32>
    %29 = arith.mulf %28, %7 : vector<16x32xf32>
    %30 = arith.addf %26, %29 : vector<16x32xf32>
    %31 = vector.extract_strided_slice %10 {offsets = [0, 4], sizes = [16, 1], strides = [1, 1]} : vector<16x25xf32> to vector<16x1xf32>
    %32 = vector.broadcast %31 : vector<16x1xf32> to vector<16x32xf32>
    %33 = arith.mulf %32, %8 : vector<16x32xf32>
    %34 = arith.addf %30, %33 : vector<16x32xf32>
    %cst_9 = arith.constant 0.000000e+00 : f32
    %35 = vector.broadcast %cst_9 : f32 to vector<16x32xf32>
    %36 = arith.cmpf ogt, %34, %35 : vector<16x32xf32>
    %37 = vector.broadcast %14 : f32 to vector<16x32xf32>
    %38 = arith.mulf %37, %34 : vector<16x32xf32>
    %39 = arith.select %36, %34, %38 : vector<16x32xi1>, vector<16x32xf32>
    %40 = vector.extract_strided_slice %10 {offsets = [0, 5], sizes = [16, 1], strides = [1, 1]} : vector<16x25xf32> to vector<16x1xf32>
    %41 = vector.broadcast %40 : vector<16x1xf32> to vector<16x32xf32>
    %42 = arith.mulf %41, %4 : vector<16x32xf32>
    %43 = arith.addf %13, %42 : vector<16x32xf32>
    %44 = vector.extract_strided_slice %10 {offsets = [0, 6], sizes = [16, 1], strides = [1, 1]} : vector<16x25xf32> to vector<16x1xf32>
    %45 = vector.broadcast %44 : vector<16x1xf32> to vector<16x32xf32>
    %46 = arith.mulf %45, %5 : vector<16x32xf32>
    %47 = arith.addf %43, %46 : vector<16x32xf32>
    %48 = vector.extract_strided_slice %10 {offsets = [0, 7], sizes = [16, 1], strides = [1, 1]} : vector<16x25xf32> to vector<16x1xf32>
    %49 = vector.broadcast %48 : vector<16x1xf32> to vector<16x32xf32>
    %50 = arith.mulf %49, %6 : vector<16x32xf32>
    %51 = arith.addf %47, %50 : vector<16x32xf32>
    %52 = vector.extract_strided_slice %10 {offsets = [0, 8], sizes = [16, 1], strides = [1, 1]} : vector<16x25xf32> to vector<16x1xf32>
    %53 = vector.broadcast %52 : vector<16x1xf32> to vector<16x32xf32>
    %54 = arith.mulf %53, %7 : vector<16x32xf32>
    %55 = arith.addf %51, %54 : vector<16x32xf32>
    %56 = vector.extract_strided_slice %10 {offsets = [0, 9], sizes = [16, 1], strides = [1, 1]} : vector<16x25xf32> to vector<16x1xf32>
    %57 = vector.broadcast %56 : vector<16x1xf32> to vector<16x32xf32>
    %58 = arith.mulf %57, %8 : vector<16x32xf32>
    %59 = arith.addf %55, %58 : vector<16x32xf32>
    %cst_10 = arith.constant 0.000000e+00 : f32
    %60 = vector.broadcast %cst_10 : f32 to vector<16x32xf32>
    %61 = arith.cmpf ogt, %59, %60 : vector<16x32xf32>
    %62 = vector.broadcast %14 : f32 to vector<16x32xf32>
    %63 = arith.mulf %62, %59 : vector<16x32xf32>
    %64 = arith.select %61, %59, %63 : vector<16x32xi1>, vector<16x32xf32>
    %65 = arith.addf %39, %64 : vector<16x32xf32>
    %66 = vector.extract_strided_slice %10 {offsets = [0, 10], sizes = [16, 1], strides = [1, 1]} : vector<16x25xf32> to vector<16x1xf32>
    %67 = vector.broadcast %66 : vector<16x1xf32> to vector<16x32xf32>
    %68 = arith.mulf %67, %4 : vector<16x32xf32>
    %69 = arith.addf %13, %68 : vector<16x32xf32>
    %70 = vector.extract_strided_slice %10 {offsets = [0, 11], sizes = [16, 1], strides = [1, 1]} : vector<16x25xf32> to vector<16x1xf32>
    %71 = vector.broadcast %70 : vector<16x1xf32> to vector<16x32xf32>
    %72 = arith.mulf %71, %5 : vector<16x32xf32>
    %73 = arith.addf %69, %72 : vector<16x32xf32>
    %74 = vector.extract_strided_slice %10 {offsets = [0, 12], sizes = [16, 1], strides = [1, 1]} : vector<16x25xf32> to vector<16x1xf32>
    %75 = vector.broadcast %74 : vector<16x1xf32> to vector<16x32xf32>
    %76 = arith.mulf %75, %6 : vector<16x32xf32>
    %77 = arith.addf %73, %76 : vector<16x32xf32>
    %78 = vector.extract_strided_slice %10 {offsets = [0, 13], sizes = [16, 1], strides = [1, 1]} : vector<16x25xf32> to vector<16x1xf32>
    %79 = vector.broadcast %78 : vector<16x1xf32> to vector<16x32xf32>
    %80 = arith.mulf %79, %7 : vector<16x32xf32>
    %81 = arith.addf %77, %80 : vector<16x32xf32>
    %82 = vector.extract_strided_slice %10 {offsets = [0, 14], sizes = [16, 1], strides = [1, 1]} : vector<16x25xf32> to vector<16x1xf32>
    %83 = vector.broadcast %82 : vector<16x1xf32> to vector<16x32xf32>
    %84 = arith.mulf %83, %8 : vector<16x32xf32>
    %85 = arith.addf %81, %84 : vector<16x32xf32>
    %cst_11 = arith.constant 0.000000e+00 : f32
    %86 = vector.broadcast %cst_11 : f32 to vector<16x32xf32>
    %87 = arith.cmpf ogt, %85, %86 : vector<16x32xf32>
    %88 = vector.broadcast %14 : f32 to vector<16x32xf32>
    %89 = arith.mulf %88, %85 : vector<16x32xf32>
    %90 = arith.select %87, %85, %89 : vector<16x32xi1>, vector<16x32xf32>
    %91 = arith.addf %65, %90 : vector<16x32xf32>
    %92 = vector.extract_strided_slice %10 {offsets = [0, 15], sizes = [16, 1], strides = [1, 1]} : vector<16x25xf32> to vector<16x1xf32>
    %93 = vector.broadcast %92 : vector<16x1xf32> to vector<16x32xf32>
    %94 = arith.mulf %93, %4 : vector<16x32xf32>
    %95 = arith.addf %13, %94 : vector<16x32xf32>
    %96 = vector.extract_strided_slice %10 {offsets = [0, 16], sizes = [16, 1], strides = [1, 1]} : vector<16x25xf32> to vector<16x1xf32>
    %97 = vector.broadcast %96 : vector<16x1xf32> to vector<16x32xf32>
    %98 = arith.mulf %97, %5 : vector<16x32xf32>
    %99 = arith.addf %95, %98 : vector<16x32xf32>
    %100 = vector.extract_strided_slice %10 {offsets = [0, 17], sizes = [16, 1], strides = [1, 1]} : vector<16x25xf32> to vector<16x1xf32>
    %101 = vector.broadcast %100 : vector<16x1xf32> to vector<16x32xf32>
    %102 = arith.mulf %101, %6 : vector<16x32xf32>
    %103 = arith.addf %99, %102 : vector<16x32xf32>
    %104 = vector.extract_strided_slice %10 {offsets = [0, 18], sizes = [16, 1], strides = [1, 1]} : vector<16x25xf32> to vector<16x1xf32>
    %105 = vector.broadcast %104 : vector<16x1xf32> to vector<16x32xf32>
    %106 = arith.mulf %105, %7 : vector<16x32xf32>
    %107 = arith.addf %103, %106 : vector<16x32xf32>
    %108 = vector.extract_strided_slice %10 {offsets = [0, 19], sizes = [16, 1], strides = [1, 1]} : vector<16x25xf32> to vector<16x1xf32>
    %109 = vector.broadcast %108 : vector<16x1xf32> to vector<16x32xf32>
    %110 = arith.mulf %109, %8 : vector<16x32xf32>
    %111 = arith.addf %107, %110 : vector<16x32xf32>
    %cst_12 = arith.constant 0.000000e+00 : f32
    %112 = vector.broadcast %cst_12 : f32 to vector<16x32xf32>
    %113 = arith.cmpf ogt, %111, %112 : vector<16x32xf32>
    %114 = vector.broadcast %14 : f32 to vector<16x32xf32>
    %115 = arith.mulf %114, %111 : vector<16x32xf32>
    %116 = arith.select %113, %111, %115 : vector<16x32xi1>, vector<16x32xf32>
    %117 = arith.addf %91, %116 : vector<16x32xf32>
    %118 = vector.extract_strided_slice %10 {offsets = [0, 20], sizes = [16, 1], strides = [1, 1]} : vector<16x25xf32> to vector<16x1xf32>
    %119 = vector.broadcast %118 : vector<16x1xf32> to vector<16x32xf32>
    %120 = arith.mulf %119, %4 : vector<16x32xf32>
    %121 = arith.addf %13, %120 : vector<16x32xf32>
    %122 = vector.extract_strided_slice %10 {offsets = [0, 21], sizes = [16, 1], strides = [1, 1]} : vector<16x25xf32> to vector<16x1xf32>
    %123 = vector.broadcast %122 : vector<16x1xf32> to vector<16x32xf32>
    %124 = arith.mulf %123, %5 : vector<16x32xf32>
    %125 = arith.addf %121, %124 : vector<16x32xf32>
    %126 = vector.extract_strided_slice %10 {offsets = [0, 22], sizes = [16, 1], strides = [1, 1]} : vector<16x25xf32> to vector<16x1xf32>
    %127 = vector.broadcast %126 : vector<16x1xf32> to vector<16x32xf32>
    %128 = arith.mulf %127, %6 : vector<16x32xf32>
    %129 = arith.addf %125, %128 : vector<16x32xf32>
    %130 = vector.extract_strided_slice %10 {offsets = [0, 23], sizes = [16, 1], strides = [1, 1]} : vector<16x25xf32> to vector<16x1xf32>
    %131 = vector.broadcast %130 : vector<16x1xf32> to vector<16x32xf32>
    %132 = arith.mulf %131, %7 : vector<16x32xf32>
    %133 = arith.addf %129, %132 : vector<16x32xf32>
    %134 = vector.extract_strided_slice %10 {offsets = [0, 24], sizes = [16, 1], strides = [1, 1]} : vector<16x25xf32> to vector<16x1xf32>
    %135 = vector.broadcast %134 : vector<16x1xf32> to vector<16x32xf32>
    %136 = arith.mulf %135, %8 : vector<16x32xf32>
    %137 = arith.addf %133, %136 : vector<16x32xf32>
    %cst_13 = arith.constant 0.000000e+00 : f32
    %138 = vector.broadcast %cst_13 : f32 to vector<16x32xf32>
    %139 = arith.cmpf ogt, %137, %138 : vector<16x32xf32>
    %140 = vector.broadcast %14 : f32 to vector<16x32xf32>
    %141 = arith.mulf %140, %137 : vector<16x32xf32>
    %142 = arith.select %139, %137, %141 : vector<16x32xi1>, vector<16x32xf32>
    %cst_14 = arith.constant 2.500000e-01 : f32
    %143 = vector.broadcast %cst_14 : f32 to vector<16x32xf32>
    %144 = arith.mulf %117, %143 : vector<16x32xf32>
    %145 = tpu.concatenate %142, %144 in 1 : vector<16x32xf32>, vector<16x32xf32> -> vector<16x64xf32>
    %cst_15 = arith.constant 0.000000e+00 : f32
    %146 = vector.broadcast %cst_15 : f32 to vector<16x64xf32>
    %147 = tpu.concatenate %145, %146 in 1 : vector<16x64xf32>, vector<16x64xf32> -> vector<16x128xf32>
    %c0_16 = arith.constant 0 : index
    %c0_17 = arith.constant 0 : index
    %148 = vector.load %arg6[%c0_16, %c0_17] : memref<16x128xf32, #tpu.memory_space<vmem>>, vector<16x128xf32>
    tpu.vector_store %arg6[%c0_16, %c0_17], %147 {strides = array<i32>} : memref<16x128xf32, #tpu.memory_space<vmem>>, vector<16x128xf32>,
    return
  }
  func.func @transform_0(%arg0: i32) -> (i32, i32, i32) {
    %c0_i32 = arith.constant 0 : i32
    %c0_i32_0 = arith.constant 0 : i32
    %c0_i32_1 = arith.constant 0 : i32
    return %c0_i32, %arg0, %c0_i32_0 : i32, i32, i32
  }
  func.func @transform_1(%arg0: i32) -> (i32, i32) {
    %c0_i32 = arith.constant 0 : i32
    %c0_i32_0 = arith.constant 0 : i32
    return %arg0, %c0_i32 : i32, i32
  }
  func.func @transform_2(%arg0: i32) -> (i32, i32) {
    %c0_i32 = arith.constant 0 : i32
    %c0_i32_0 = arith.constant 0 : i32
    %c0_i32_1 = arith.constant 0 : i32
    return %c0_i32, %c0_i32_0 : i32, i32
  }
  func.func @transform_3(%arg0: i32) -> (i32, i32) {
    %c0_i32 = arith.constant 0 : i32
    %c0_i32_0 = arith.constant 0 : i32
    %c0_i32_1 = arith.constant 0 : i32
    return %c0_i32, %c0_i32_0 : i32, i32
  }
  func.func @transform_4(%arg0: i32) -> i32 {
    %c0_i32 = arith.constant 0 : i32
    %c0_i32_0 = arith.constant 0 : i32
    return %c0_i32 : i32
  }
  func.func @transform_5(%arg0: i32) -> (i32, i32) {
    %c0_i32 = arith.constant 0 : i32
    %c0_i32_0 = arith.constant 0 : i32
    return %arg0, %c0_i32 : i32, i32
  }
}

</mosaic_0001>

<bundles_post_ra>
// kernel: tpu_custom_call.1
= control target key start
LH: loop header
LB: loop body
LE: loop exit
PB: predicated region body
PF: predicated region fallthrough
CT: control target
= control target key end

     0   :  { %vm75_vm0 = vcmask 1043456   ;;  %v793_v2 = vmov 0.0   ;;  %vm59_vm1 = vcmask 64512   ;;  %vm794_vm2 = vmmov 0   ;;  %s1151_s0 = inlined_call_operand.vmem [shape: bf16[5,16,8], index: 0, kind: input, shape index: {}]   ;;  %s1152_s1 = inlined_call_operand.vmem [shape: bf16[16,25], index: 1, kind: input, shape index: {}]   ;;  %s1153_s2 = inlined_call_operand.vmem [shape: bf16[8,32], index: 2, kind: input, shape index: {}]   ;;  %s1154_s3 = inlined_call_operand.vmem [shape: f32[1,32], index: 3, kind: input, shape index: {}]   ;;  %s1155_s4 = inlined_call_operand.<no memory space> [shape: f32[1], index: 4, kind: input, shape index: {}]   ;;  %s1156_s5 = inlined_call_operand.hbm [shape: f32[16,128], index: 5, kind: output, shape index: {}]  }
   0x1   :  { %v33_v0 = vld [vmem:[%s1153_s2] sm:$0xf]  ;;  %558 = vmatprep.subr.bf16.mxu0 %v793_v2  ;;  %580 = vmatprep.subr.bf16.mxu1 %v793_v2  ;;  %v765_v4 = vld [vmem:[%s1151_s0 + $0x18] sm:$0xff]   ;;  %v795_v5 = vmov 2   ;;  %v796_v9 = vmov 0  }
   0x2   :  { %v764_v1 = vld [vmem:[%s1151_s0] sm:$0xff]   ;;  %v77_v3 = vsel %vm75_vm0, %v33_v0, 0  ;;  %560 = vmatprep.mubr.msk.bf16.mxu0 %vm794_vm2, %v793_v2  ;;  %572 = vmatprep.mubr.msk.bf16.mxu1 %vm794_vm2, %v793_v2 }
   0x3   :  { %559 = vmatpush3.bf16.msra.mxu0 %v77_v3  ;;  %581 = vmatpush3.bf16.msra.mxu1 %v77_v3  ;;  %v549_v6 = vld [vmem:[%s1152_s1] sm:$0xff]  }
   0x4   :  { %625 = vset.pattern.permute.xlu1 %v795_v5  ;;  %v550_v7 = vunpack.c.l.bf16 %v549_v6  ;;  %v551_v8 = vunpack.c.h.bf16 %v549_v6  ;;  %613 = vset.pattern.permute.xlu0 %v796_v9 }
   0x6   :  { %561 = vmatmul.mubr.msk.bf16.vlgmr.msra.gmra.mrb[0].mxu0 %vm59_vm1, %v764_v1  ;;  %573 = vmatmul.mubr.msk.bf16.vlgmr.msra.gmra.mrb[0].mxu1 %vm59_vm1, %v765_v4 }
   0x7   :  { %564 = vmatprep.mubr.msk.bf16.mxu0 %vm794_vm2, %v793_v2  ;;  %576 = vmatprep.mubr.msk.bf16.mxu1 %vm794_vm2, %v793_v2 }
   0x8   :  { %11 = vsyncpa [#allocation4], 0  ;;  %v766_v10 = vld [vmem:[%s1151_s0 + $0x8] sm:$0xff]   ;;  %v767_v11 = vld [vmem:[%s1151_s0 + $0x20] sm:$0xff]   ;;  %v878_v12 = vpack.i.bf16 %v551_v8, %v550_v7  ;;  %v797_v13 = vmov 3   ;;  %v798_v14 = vmov 1   ;;  %v959_v60 = vstv %s1155_s4 }
   0x9   :  { %v768_v15 = vld [vmem:[%s1151_s0 + $0x10] sm:$0xff]   ;;  %v799_v16 = vmov 4   ;;  %v800_v17 = vmov 5   ;;  %v801_v18 = vmov 6   ;;  %v802_v19 = vmov 10   ;;  %s821_s7 = smov [#allocation3]  }
   0xa   :  { %627 = vperm.xlu1 %625, %v878_v12   ;;  %615 = vperm.xlu0 %613, %v878_v12   ;;  %v803_v20 = vmov 7   ;;  %v804_v21 = vmov 8   ;;  %v805_v22 = vmov 11   ;;  %v806_v23 = vmov 9   ;;  %s526_s8 = sshll.u32 %s821_s7, 4  ;;  %s527_s8 = int_to_ptr.vmem [resolvable:$true] %s526_s8 }
   0xb   :  { %v807_v24 = vmov 15   ;;  %v808_v25 = vmov 14   ;;  %v809_v26 = vmov 12   ;;  %v810_v27 = vmov 20   ;;  %s769_s9 = scalar_lea.vmem %s527_s8, 256  ;;  %p774_p1 = scmp.lt.s32.totalorder %s527_s8, %s527_s8 }
   0xc   :  { %v811_v28 = vmov 16   ;;  %v812_v29 = vmov 23   ;;  %v813_v30 = vmov 13   ;;  %v814_v31 = vmov 24   ;;  %p770_p0 = scmp.ne.s32.totalorder %s527_s8, %s769_s9  ;;  %p775_p2 = scmp.lt.s32.totalorder %s769_s9, %s769_s9 }
   0xd   :  { %v815_v32 = vmov 17   ;;  %v816_v33 = vmov 18   ;;  %v817_v34 = vmov 19   ;;  %v818_v35 = vmov 21  }
   0xe   :  { %565 = vmatmul.mubr.msk.bf16.gmra.mrb[4].mxu0 %vm59_vm1, %v766_v10  ;;  %577 = vmatmul.mubr.msk.bf16.gmra.mrb[4].mxu1 %vm59_vm1, %v767_v11  ;;  %v819_v36 = vmov 22   ;;  %vm513_vm13 = vcmask 261120   ;;  %vm516_vm14 = vcmask 523264   ;;  %p776_p3 = por %p775_p2, %p774_p1 }
   0xf   :  { %568 = vmatprep.mubr.msk.bf16.mxu0 %vm794_vm2, %v793_v2  ;;  %631 = vset.pattern.permute.xlu1 %v797_v13 }
  0x10   :  { %633 = vperm.xlu1 %631, %v878_v12   ;;  %619 = vset.pattern.permute.xlu0 %v798_v14  ;;  %p777_p4 = pnand %p776_p3, %p770_p0 }
  0x11   :  { %621 = vperm.xlu0 %619, %v878_v12  }
  0x14   :  { %637 = vset.pattern.permute.xlu1 %v799_v16 }
  0x15   :  { %639 = vperm.xlu1 %637, %v878_v12   ;;  %643 = vset.pattern.permute.xlu0 %v800_v17 }
  0x16   :  { %569 = vmatmul.mubr.msk.bf16.gmra.mrb[8].mxu0 %vm59_vm1, %v768_v15  ;;  %645 = vperm.xlu0 %643, %v878_v12  }
  0x19   :  { %649 = vset.pattern.permute.xlu1 %v801_v18 }
  0x1a   :  { %651 = vperm.xlu1 %649, %v878_v12   ;;  %661 = vset.pattern.permute.xlu0 %v802_v19 }
  0x1b   :  { %663 = vperm.xlu0 %661, %v878_v12  }
  0x1e   :  { %655 = vset.pattern.permute.xlu1 %v803_v20 }
  0x1f   :  { %657 = vperm.xlu1 %655, %v878_v12   ;;  %679 = vset.pattern.permute.xlu0 %v804_v21 }
  0x20   :  { %681 = vperm.xlu0 %679, %v878_v12  }
  0x23   :  { %667 = vset.pattern.permute.xlu1 %v805_v22 }
  0x24   :  { %669 = vperm.xlu1 %667, %v878_v12   ;;  %697 = vset.pattern.permute.xlu0 %v806_v23 }
  0x25   :  { %699 = vperm.xlu0 %697, %v878_v12  }
  0x28   :  { %673 = vset.pattern.permute.xlu1 %v807_v24 }
  0x29   :  { %675 = vperm.xlu1 %673, %v878_v12   ;;  %715 = vset.pattern.permute.xlu0 %v808_v25 }
  0x2a   :  { %717 = vperm.xlu0 %715, %v878_v12  }
  0x2d   :  { %685 = vset.pattern.permute.xlu1 %v809_v26 }
  0x2e   :  { %687 = vperm.xlu1 %685, %v878_v12   ;;  %733 = vset.pattern.permute.xlu0 %v810_v27 }
  0x2f   :  { %735 = vperm.xlu0 %733, %v878_v12  }
  0x32   :  { %691 = vset.pattern.permute.xlu1 %v811_v28 }
  0x33   :  { %693 = vperm.xlu1 %691, %v878_v12   ;;  %751 = vset.pattern.permute.xlu0 %v812_v29 }
  0x34   :  { %753 = vperm.xlu0 %751, %v878_v12  }
  0x37   :  { %703 = vset.pattern.permute.xlu1 %v813_v30 }
  0x38   :  { %705 = vperm.xlu1 %703, %v878_v12   ;;  %763 = vset.pattern.permute.xlu0 %v814_v31 }
  0x3c   :  { %709 = vset.pattern.permute.xlu1 %v815_v32 }
  0x3d   :  { %711 = vperm.xlu1 %709, %v878_v12  }
  0x41   :  { %721 = vset.pattern.permute.xlu1 %v816_v33 }
  0x42   :  { %723 = vperm.xlu1 %721, %v878_v12  }
  0x46   :  { %727 = vset.pattern.permute.xlu1 %v817_v34 }
  0x47   :  { %729 = vperm.xlu1 %727, %v878_v12  }
  0x4b   :  { %739 = vset.pattern.permute.xlu1 %v818_v35 }
  0x4c   :  { %741 = vperm.xlu1 %739, %v878_v12  }
  0x50   :  { %745 = vset.pattern.permute.xlu1 %v819_v36 }
  0x51   :  { %747 = vperm.xlu1 %745, %v878_v12  }
  0x55   :  { %757 = vset.pattern.permute.xlu1 %v814_v31 }
  0x56   :  { %759 = vperm.xlu1 %757, %v878_v12  }
  0x89   :  { %v912_v37 = vpop.permute.xlu1 %627  ;;  %v924_v43 = vpop.permute.xlu0 %615 }
  0x8a   :  { %v618_v63 = vunpack.i.h.bf16 %v924_v43  ;;  %v617_v0 = vunpack.i.l.bf16 %v924_v43 }
  0x8f   :  { %v914_v38 = vpop.permute.xlu1 %633 }
  0x90   :  { %v928_v45 = vpop.permute.xlu0 %621  ;;  %v636_v61 = vunpack.i.h.bf16 %v914_v38  ;;  %v635_v62 = vunpack.i.l.bf16 %v914_v38 }
  0x91   :  { %v624_v3 = vunpack.i.h.bf16 %v928_v45  ;;  %v623_v4 = vunpack.i.l.bf16 %v928_v45 }
  0x94   :  { %v916_v39 = vpop.permute.xlu1 %639 }
  0x95   :  { %v932_v47 = vpop.permute.xlu0 %645 }
  0x96   :  { %v648_v8 = vunpack.i.h.bf16 %v932_v47  ;;  %v647_v9 = vunpack.i.l.bf16 %v932_v47 }
  0x99   :  { %v918_v40 = vpop.permute.xlu1 %651 }
  0x9a   :  { %v938_v50 = vpop.permute.xlu0 %663  ;;  %v654_v6 = vunpack.i.h.bf16 %v918_v40  ;;  %v653_v7 = vunpack.i.l.bf16 %v918_v40 }
  0x9b   :  { %v666_v13 = vunpack.i.h.bf16 %v938_v50  ;;  %v665_v14 = vunpack.i.l.bf16 %v938_v50 }
  0x9e   :  { %v920_v41 = vpop.permute.xlu1 %657 }
  0x9f   :  { %v942_v52 = vpop.permute.xlu0 %681 }
  0xa0   :  { %v684_v17 = vunpack.i.h.bf16 %v942_v52  ;;  %v683_v18 = vunpack.i.l.bf16 %v942_v52 }
  0xa3   :  { %v922_v42 = vpop.permute.xlu1 %669 }
  0xa4   :  { %v946_v54 = vpop.permute.xlu0 %699  ;;  %v671_v16 = vunpack.i.l.bf16 %v922_v42 }
  0xa8   :  { %v926_v44 = vpop.permute.xlu1 %675 }
  0xa9   :  { %v950_v56 = vpop.permute.xlu0 %717  ;;  %v678_v19 = vunpack.i.h.bf16 %v926_v44  ;;  %v677_v20 = vunpack.i.l.bf16 %v926_v44 }
  0xad   :  { %v930_v46 = vpop.permute.xlu1 %687 }
  0xae   :  { %v969_v5 = vpop.permute.xlu0 %735 }
  0xaf   :  { %v738_v30 = vunpack.i.h.bf16 %v969_v5  ;;  %v737_v31 = vunpack.i.l.bf16 %v969_v5 }
  0xb2   :  { %v934_v48 = vpop.permute.xlu1 %693 }
  0xb3   :  { %v989_v23 = vpop.permute.xlu0 %753  ;;  %v695_v29 = vunpack.i.l.bf16 %v934_v48 }
  0xb4   :  { %v1161_v45 = vunpack.i.h.bf16 %v989_v23 }
  0xb7   :  { %v936_v49 = vpop.permute.xlu1 %705 }
  0xb8   :  { %v708_v32 = vunpack.i.h.bf16 %v936_v49  ;;  %v707_v33 = vunpack.i.l.bf16 %v936_v49  ;;  %v547_v49 = vld [vmem:[%s1154_s3] ss:$0 sm:$0xff]  ;;  %s820_s3 = smov 32  }
  0xbc   :  { %v940_v51 = vpop.permute.xlu1 %711 }
  0xc1   :  { %v944_v53 = vpop.permute.xlu1 %723 }
  0xc2   :  { %v726_v50 = vunpack.i.h.bf16 %v944_v53  ;;  %v725_v24 = vunpack.i.l.bf16 %v944_v53 }
  0xc6   :  { %v948_v55 = vpop.permute.xlu1 %729 }
  0xcb   :  { %v952_v57 = vpop.permute.xlu1 %741 }
  0xcc   :  { %v744_v44 = vunpack.i.h.bf16 %v952_v57  ;;  %v743_v47 = vunpack.i.l.bf16 %v952_v57 }
  0xd0   :  { %v975_v10 = vpop.permute.xlu1 %747 }
  0xd5   :  { %v1003_v36 = vpop.permute.xlu1 %759 }
  0xd9   :  { %v113_v11 = vpop.f32.mrb[0].mxu0  ;;  %v1009_v5 = vpop.f32.mrb[0].mxu1 }
  0xda   :  { %v562_v58 = vpop.f32.mrb[1].mxu0  ;;  %v574_v26 = vpop.f32.mrb[1].mxu1  ;;  %v174_v59 = vmul.f32 %v617_v0, %v113_v11  ;;  %v241_v21 = vmul.f32 %v647_v9, %v113_v11  ;;  %v445_v1 = vmul.f32 %v737_v31, %v113_v11  ;;  %v309_v2 = vmul.f32 %v665_v14, %v113_v11 }
  0xdb   :  { %v116_v27 = vpop.f32.mrb[2].mxu0  ;;  %v140_v22 = vpop.f32.mrb[2].mxu1  ;;  %v377_v28 = vmul.f32 %v677_v20, %v113_v11  ;;  %v1027_v9 = vmul.f32 %v635_v62, %v1009_v5  ;;  %v1030_v11 = vmul.f32 %v683_v18, %v1009_v5  ;;  %v1033_v14 = vmul.f32 %v707_v33, %v1009_v5 }
  0xdc   :  { %v563_v15 = vpop.f32.mrb[3].mxu0  ;;  %v575_v58 = vpop.f32.mrb[3].mxu1  ;;  %v447_v12 = vadd.f32 %v547_v49, %v445_v1  ;;  %v175_v35 = vmul.f32 %v618_v63, %v116_v27  ;;  %v242_v57 = vmul.f32 %v648_v8, %v116_v27  ;;  %v176_v20 = vadd.f32 %v547_v49, %v174_v59 }
  0xdd   :  { %v446_v15 = vmul.f32 %v738_v30, %v116_v27  ;;  %v243_v1 = vadd.f32 %v547_v49, %v241_v21  ;;  %v310_v31 = vmul.f32 %v666_v13, %v116_v27  ;;  %v378_v43 = vmul.f32 %v678_v19, %v116_v27 }
  0xde   :  { %v311_v63 = vadd.f32 %v547_v49, %v309_v2  ;;  %v379_v8 = vadd.f32 %v547_v49, %v377_v28  ;;  %v1036_v58 = vmul.f32 %v725_v24, %v1009_v5  ;;  %v177_v34 = vadd.f32 %v547_v49, %v175_v35 }
  0xdf   :  { %v448_v25 = vadd.f32 %v547_v49, %v446_v15  ;;  %v244_v62 = vadd.f32 %v547_v49, %v242_v57  ;;  %v1040_v18 = vmul.f32 %v636_v61, %v140_v22  ;;  %v1044_v33 = vmul.f32 %v684_v17, %v140_v22 }
  0xe0   :  { %v312_v61 = vadd.f32 %v547_v49, %v310_v31  ;;  %v380_v28 = vadd.f32 %v547_v49, %v378_v43  ;;  %v1052_v30 = vmul.f32 %v708_v32, %v140_v22 }
  0xe1   :  { %v121_v59 = vpop.f32.mrb[4].mxu0  ;;  %v145_v21 = vpop.f32.mrb[4].mxu1 }
  0xe2   :  { %v186_v2 = vmul.f32 %v623_v4, %v121_v59  ;;  %v253_v13 = vmul.f32 %v653_v7, %v121_v59  ;;  %v321_v19 = vmul.f32 %v671_v16, %v121_v59  ;;  %v389_v24 = vmul.f32 %v695_v29, %v121_v59  ;;  %v566_v27 = vpop.f32.mrb[5].mxu0  ;;  %v578_v38 = vpop.f32.mrb[5].mxu1 }
  0xe3   :  { %v457_v52 = vmul.f32 %v743_v47, %v121_v59  ;;  %v124_v17 = vpop.f32.mrb[6].mxu0  ;;  %v1054_v35 = vpop.f32.mrb[6].mxu1  ;;  %v1058_v16 = vmul.f32 %v726_v50, %v140_v22  ;;  %v1157_v47 = vunpack.i.l.bf16 %v989_v23  ;;  %v1160_v50 = vunpack.i.l.bf16 %v916_v39 }
  0xe4   :  { %v188_v57 = vadd.f32 %v186_v2, %v176_v20  ;;  %v255_v15 = vadd.f32 %v253_v13, %v243_v1  ;;  %v323_v4 = vadd.f32 %v321_v19, %v311_v63  ;;  %v391_v0 = vadd.f32 %v389_v24, %v379_v8  ;;  %v567_v26 = vpop.f32.mrb[7].mxu0  ;;  %v579_v7 = vpop.f32.mrb[7].mxu1 }
  0xe5   :  { %v459_v29 = vadd.f32 %v457_v52, %v447_v12  ;;  %v187_v49 = vmul.f32 %v624_v3, %v124_v17  ;;  %v254_v32 = vmul.f32 %v654_v6, %v124_v17  ;;  %v481_v20 = vmul.f32 %v1157_v47, %v1009_v5 }
  0xe6   :  { %v1158_v1 = vunpack.i.h.bf16 %v922_v42  ;;  %v1159_v26 = vunpack.i.h.bf16 %v934_v48  ;;  %v458_v53 = vmul.f32 %v744_v44, %v124_v17  ;;  %v222_v12 = vmul.f32 %v1160_v50, %v145_v21 }
  0xe7   :  { %v1075_v3 = vmul.f32 %v1161_v45, %v140_v22  ;;  %v189_v40 = vadd.f32 %v187_v49, %v177_v34  ;;  %v256_v6 = vadd.f32 %v254_v32, %v244_v62  ;;  %v1162_v63 = vunpack.i.l.bf16 %v946_v54 }
  0xe8   :  { %v322_v31 = vmul.f32 %v1158_v1, %v124_v17  ;;  %v390_v43 = vmul.f32 %v1159_v26, %v124_v17  ;;  %v460_v42 = vadd.f32 %v458_v53, %v448_v25  ;;  %v1163_v2 = vunpack.i.l.bf16 %v950_v56 }
  0xe9   :  { %v289_v8 = vmul.f32 %v1162_v63, %v145_v21  ;;  %v1164_v44 = vunpack.i.l.bf16 %v948_v55  ;;  %v1165_v19 = vunpack.i.h.bf16 %v916_v39  ;;  %v1166_v22 = vunpack.i.h.bf16 %v946_v54  ;;  %v129_v62 = vpop.f32.mrb[8].mxu0 }
  0xea   :  { %v324_v5 = vadd.f32 %v322_v31, %v312_v61  ;;  %v392_v59 = vadd.f32 %v390_v43, %v380_v28  ;;  %v357_v48 = vmul.f32 %v1163_v2, %v145_v21  ;;  %v1167_v24 = vunpack.i.l.bf16 %v912_v37  ;;  %v570_v7 = vpop.f32.mrb[9].mxu0 }
  0xeb   :  { %v425_v13 = vmul.f32 %v1164_v44, %v145_v21  ;;  %v223_v23 = vmul.f32 %v1165_v19, %v1054_v35  ;;  %v290_v34 = vmul.f32 %v1166_v22, %v1054_v35  ;;  %v1168_v25 = vunpack.i.l.bf16 %v920_v41  ;;  %v132_v43 = vpop.f32.mrb[10].mxu0 }
  0xec   :  { %v198_v27 = vmul.f32 %v1167_v24, %v129_v62  ;;  %v1169_v61 = vunpack.i.l.bf16 %v930_v46  ;;  %v1170_v52 = vunpack.i.l.bf16 %v940_v51  ;;  %v1171_v39 = vunpack.i.h.bf16 %v950_v56  ;;  %v571_v2 = vpop.f32.mrb[11].mxu0 }
  0xed   :  { %v265_v38 = vmul.f32 %v1168_v25, %v129_v62  ;;  %v1172_v54 = vunpack.i.h.bf16 %v948_v55  ;;  %v1173_v47 = vunpack.i.l.bf16 %v975_v10  ;;  %v1174_v31 = vunpack.i.l.bf16 %v1003_v36 }
  0xee   :  { %v333_v28 = vmul.f32 %v1169_v61, %v129_v62  ;;  %v401_v17 = vmul.f32 %v1170_v52, %v129_v62  ;;  %v358_v49 = vmul.f32 %v1171_v39, %v1054_v35  ;;  %v200_v53 = vadd.f32 %v198_v27, %v188_v57 }
  0xef   :  { %v426_v32 = vmul.f32 %v1172_v54, %v1054_v35  ;;  %v469_v1 = vmul.f32 %v1173_v47, %v129_v62  ;;  %v493_v26 = vmul.f32 %v1174_v31, %v145_v21  ;;  %v267_v50 = vadd.f32 %v265_v38, %v255_v15 }
  0xf0   :  { %v335_v45 = vadd.f32 %v333_v28, %v323_v4  ;;  %v403_v63 = vadd.f32 %v401_v17, %v391_v0  ;;  %v1175_v56 = vunpack.i.h.bf16 %v912_v37  ;;  %v1176_v22 = vunpack.i.h.bf16 %v920_v41 }
  0xf1   :  { %v471_v44 = vadd.f32 %v469_v1, %v459_v29  ;;  %v1177_v24 = vunpack.i.h.bf16 %v930_v46  ;;  %v212_v62 = vadd.f32 %v1027_v9, %v200_v53  ;;  %v279_v21 = vadd.f32 %v1030_v11, %v267_v50 }
  0xf2   :  { %v199_v19 = vmul.f32 %v1175_v56, %v132_v43  ;;  %v266_v55 = vmul.f32 %v1176_v22, %v132_v43  ;;  %v347_v57 = vadd.f32 %v1033_v14, %v335_v45  ;;  %v1178_v15 = vunpack.i.h.bf16 %v940_v51 }
  0xf3   :  { %v334_v25 = vmul.f32 %v1177_v24, %v132_v43  ;;  %v483_v4 = vadd.f32 %v481_v20, %v471_v44  ;;  %v1179_v41 = vunpack.i.h.bf16 %v975_v10  ;;  %v224_v28 = vadd.f32 %v222_v12, %v212_v62 }
  0xf4   :  { %v402_v0 = vmul.f32 %v1178_v15, %v132_v43  ;;  %v201_v29 = vadd.f32 %v199_v19, %v189_v40  ;;  %v268_v27 = vadd.f32 %v266_v55, %v256_v6  ;;  %v291_v46 = vadd.f32 %v289_v8, %v279_v21 }
  0xf5   :  { %v336_v37 = vadd.f32 %v334_v25, %v324_v5  ;;  %v470_v61 = vmul.f32 %v1179_v41, %v132_v43  ;;  %v495_v52 = vadd.f32 %v493_v26, %v483_v4  ;;  %vm226_vm3 = vcmp.gt.f32.partialorder %v224_v28, 0.0 }
  0xf6   :  { %v404_v38 = vadd.f32 %v402_v0, %v392_v59  ;;  %v213_v9 = vadd.f32 %v1040_v18, %v201_v29  ;;  %v280_v11 = vadd.f32 %v1044_v33, %v268_v27  ;;  %v229_v51 = vmul.f32 %v959_v60, %v224_v28 }
  0xf7   :  { %v348_v14 = vadd.f32 %v1052_v30, %v336_v37  ;;  %v472_v17 = vadd.f32 %v470_v61, %v460_v42  ;;  %vm293_vm4 = vcmp.gt.f32.partialorder %v291_v46, 0.0  ;;  %v295_v20 = vmul.f32 %v291_v46, %v959_v60 }
  0xf8   :  { %v359_v40 = vadd.f32 %v357_v48, %v347_v57  ;;  %v415_v10 = vadd.f32 %v1036_v58, %v403_v63  ;;  %v225_v6 = vadd.f32 %v223_v23, %v213_v9  ;;  %v231_v12 = vsel %vm226_vm3, %v224_v28, %v229_v51 }
  0xf9   :  { %v292_v8 = vadd.f32 %v290_v34, %v280_v11  ;;  %v360_v5 = vadd.f32 %v358_v49, %v348_v14  ;;  %v416_v18 = vadd.f32 %v1058_v16, %v404_v38  ;;  %v297_v59 = vsel %vm293_vm4, %v291_v46, %v295_v20 }
  0xfa   :  { %vm361_vm5 = vcmp.gt.f32.partialorder %v359_v40, 0.0  ;;  %v363_v33 = vmul.f32 %v359_v40, %v959_v60  ;;  %v427_v30 = vadd.f32 %v425_v13, %v415_v10  ;;  %v299_v42 = vadd.f32 %v297_v59, %v231_v12 }
  0xfb   :  { %vm227_vm6 = vcmp.gt.f32.partialorder %v225_v6, 0.0  ;;  %v230_v7 = vmul.f32 %v959_v60, %v225_v6  ;;  %vm294_vm7 = vcmp.gt.f32.partialorder %v292_v8, 0.0  ;;  %v296_v48 = vmul.f32 %v292_v8, %v959_v60 }
  0xfc   :  { %v365_v39 = vsel %vm361_vm5, %v359_v40, %v363_v33  ;;  %vm429_vm8 = vcmp.gt.f32.partialorder %v427_v30, 0.0  ;;  %v431_v58 = vmul.f32 %v427_v30, %v959_v60  ;;  %vm362_vm9 = vcmp.gt.f32.partialorder %v360_v5, 0.0 }
  0xfd   :  { %v367_v23 = vadd.f32 %v365_v39, %v299_v42  ;;  %v232_v34 = vsel %vm227_vm6, %v225_v6, %v230_v7  ;;  %v364_v16 = vmul.f32 %v360_v5, %v959_v60  ;;  %v298_v54 = vsel %vm294_vm7, %v292_v8, %v296_v48 }
  0xfe   :  { %v433_v49 = vsel %vm429_vm8, %v427_v30, %v431_v58  ;;  %v428_v47 = vadd.f32 %v426_v32, %v416_v18  ;;  %vm497_vm10 = vcmp.gt.f32.partialorder %v495_v52, 0.0  ;;  %v1180_v13 = vunpack.i.h.bf16 %v1003_v36 }
  0xff   :  { %v435_v31 = vadd.f32 %v433_v49, %v367_v23  ;;  %v300_v26 = vadd.f32 %v298_v54, %v232_v34  ;;  %v499_v43 = vmul.f32 %v495_v52, %v959_v60  ;;  %v366_v53 = vsel %vm362_vm9, %v360_v5, %v364_v16 }
 0x100   :  { %v494_v1 = vmul.f32 %v1180_v13, %v1054_v35  ;;  %vm430_vm11 = vcmp.gt.f32.partialorder %v428_v47, 0.0  ;;  %v432_v50 = vmul.f32 %v428_v47, %v959_v60  ;;  %v484_v45 = vadd.f32 %v1075_v3, %v472_v17 }
 0x101   :  { %v503_v63 = vmul.f32 0.25, %v435_v31  ;;  %v368_v2 = vadd.f32 %v366_v53, %v300_v26  ;;  %v501_v44 = vsel %vm497_vm10, %v495_v52, %v499_v43 }
 0x102   :  { %v434_v56 = vsel %vm430_vm11, %v428_v47, %v432_v50  ;;  %v496_v32 = vadd.f32 %v494_v1, %v484_v45 }
 0x103   :  { %507 = vrot.lane.b32.xlu1 %v503_v63, %s820_s3  ;;  %v436_v19 = vadd.f32 %v434_v56, %v368_v2 }
 0x104   :  { %vm498_vm12 = vcmp.gt.f32.partialorder %v496_v32, 0.0  ;;  %v500_v36 = vmul.f32 %v496_v32, %v959_v60 }
 0x105   :  { %v504_v35 = vmul.f32 0.25, %v436_v19 }
 0x106   :  { %v502_v22 = vsel %vm498_vm12, %v496_v32, %v500_v36 }
 0x107   :  { %509 = vrot.lane.b32.xlu0 %v504_v35, %s820_s3 }
 0x175   :  { %v508_v55 = vpop.permute.xlu1 %507 }
 0x176   :  { %v514_v24 = vsel %vm513_vm13, %v501_v44, %v508_v55 }
 0x177   :  { %v517_v25 = vsel %vm516_vm14, %v514_v24, 0.0 }
 0x178   :  { %519 = vst [vmem:[#allocation3] sm:$0xff] %v517_v25 }
 0x179   :  { %v510_v3 = vpop.permute.xlu0 %509 }
 0x17a   :  { %v515_v62 = vsel %vm513_vm13, %v502_v22, %v510_v3 }
 0x17b   :  { %v518_v21 = vsel %vm516_vm14, %v515_v62, 0.0 }
 0x17c   :  { %520 = vst [vmem:[#allocation3 + $0x8] sm:$0xff] %v518_v21 }
 0x17d   :  { %780 = shalt.err (!%p777_p4)
}
 0x17e   :  { %s781_s12 = scalar_lea.hbm %s1156_s5, 256 }
 0x17f   :  { %p782_p5 = scmp.ne.s32.totalorder %s1156_s5, %s781_s12  ;;  %p785_p6 = scmp.lt.u32.totalorder %s781_s12, %s1156_s5 }
 0x181   :  { %p787_p7 = pnand %p785_p6, %p782_p5 }
 0x183   :  { %790 = shalt.err (!%p787_p7)
}
 0x184   :  { %s822_s17 = smov 128   ;;  %s823_s18 = smov 8  }
 0x185   :  { %532 = dma.vmem_to_hbm [thread:$0]  %s527_s8, 256, %s1156_s5, [#allocation4], %s822_s17, %s822_s17, %s823_s18  }
 0x186   :  { %791 = dma.done.wait [#allocation4], 256  }
 0x187   :  { %792 = vsyncadd [#allocation4], 4294967040 }
 0x188   :  { %536 = vsyncpa [#allocation4], 1 }

</bundles_post_ra>
